<compile_context>
chip_gen: v7x
topology: tpu7x:2x2x1
jax: 0.10.0
libtpu: 0.0.40
codegen_flags: <defaults>
</compile_context>

<pallas_src>
import functools

import numpy as np
import jax
import jax.numpy as jnp
from jax.experimental import pallas as pl
from jax.experimental.pallas import tpu as pltpu

LANE = 128
MAX_TILE_ROWS = 2048   # 2 MiB f32 per operand block -> 8 MiB double-buffered

# numpy scalar (NOT a jnp array) so it becomes a literal inside the kernel jaxpr
# instead of a captured constant (the v2 compile failure).
_MUL = np.uint32(0x9E3779B1)        # Fibonacci / Knuth multiplicative constant


def _hash31(x_u32, seed_u32):
    """Single-multiply mixer -> non-negative int32 (31 random bits).

    Pure uint32 integer ops (xor / logical shift / wrapping mul), so the
    pure-JAX reference (XLA) and the kernel (Mosaic) are bit-identical.
    """
    x = (x_u32 ^ seed_u32) * _MUL
    x = x ^ (x >> 15)
    return (x >> 1).astype(jnp.int32)       # in [0, 2**31)


def _focused_asc_kernel(scal_ref, pred_ref, true_ref, out_ref, *, hw, aligned):
    """One (image, row-tile) block.

    pred_ref / true_ref : (2, TILE_R, 128)   channel 0 = A, channel 1 = alpha
    scal_ref            : SMEM (2,) int32    [hash seed, Bernoulli threshold]
    out_ref             : (8, 128) f32 lane-partial sums (single full-vreg store):
        row 0  fg  sum((dA)^2 + (dalpha)^2)      row 1  fg  count
        row 2  bg-sampled sum of same            row 3  bg-sampled count
        rows 4..7 zeros (pad to a whole (8,128) vreg)
    """
    tile_r = pred_ref.shape[1]
    b = pl.program_id(0)
    t = pl.program_id(1)

    seed = scal_ref[0].astype(jnp.uint32)
    thr = scal_ref[1]

    rows = jax.lax.broadcasted_iota(jnp.int32, (tile_r, LANE), 0) + t * tile_r
    lanes = jax.lax.broadcasted_iota(jnp.int32, (tile_r, LANE), 1)
    pix = rows * LANE + lanes                       # per-image flat pixel index

    p_A = pred_ref[0].astype(jnp.float32)
    p_al = pred_ref[1].astype(jnp.float32)
    t_A = true_ref[0].astype(jnp.float32)
    t_al = true_ref[1].astype(jnp.float32)

    if aligned:                                     # fast path: every element is a real pixel
        fg = t_A > 0.0
        bg = jnp.logical_not(fg)
    else:                                           # masks 128-pad + ragged tail rows
        valid = pix < hw
        fg = valid & (t_A > 0.0)
        bg = valid & (t_A <= 0.0)

    # Bernoulli(ratio) background sub-sampling; no random/mask stream from HBM.
    # (Wrapper asserts B*H*W < 2**31 so the global index fits in int32.)
    h = _hash31((b * hw + pix).astype(jnp.uint32), seed)
    sel = bg & (h < thr)

    d_A = p_A - t_A
    d_al = p_al - t_al
    sq = d_A * d_A + d_al * d_al                    # channels merged: only the sum is consumed

    # `where` (not mask-multiply) so garbage in unloaded/padded rows can't leak NaN/Inf.
    fg_sq = jnp.where(fg, sq, 0.0).sum(axis=0, keepdims=True)
    fg_cnt = fg.astype(jnp.float32).sum(axis=0, keepdims=True)
    bg_sq = jnp.where(sel, sq, 0.0).sum(axis=0, keepdims=True)
    bg_cnt = sel.astype(jnp.float32).sum(axis=0, keepdims=True)

    out_ref[...] = jnp.concatenate(
        [fg_sq, fg_cnt, bg_sq, bg_cnt, jnp.zeros((4, LANE), jnp.float32)], axis=0)


def _choose_tile(num_rows, batch):
    tile_r = min(num_rows, MAX_TILE_ROWS)
    # v7x megacore: make sure the "parallel" grid has >= 2 points when possible.
    if batch * pl.cdiv(num_rows, tile_r) < 2 and num_rows >= 16:
        tile_r = (((num_rows + 1) // 2) + 7) // 8 * 8   # ~R/2, sublane-aligned
    return tile_r, pl.cdiv(num_rows, tile_r)


def focused_asc_loss(predicted_params, true_params, key,
                     background_sample_ratio=0.1):
    B, C, H, W = predicted_params.shape
    assert C == 2, "expected 2 parameter channels (A, alpha)"
    HW = H * W
    assert B * HW < 2 ** 31, "flat pixel index must fit in int32"
    HW_pad = ((HW + LANE - 1) // LANE) * LANE
    R = HW_pad // LANE
    tile_r, T = _choose_tile(R, B)
    aligned = (HW % LANE == 0) and (R % tile_r == 0)

    # Background sampling threshold: fixed Bernoulli(ratio) hash threshold,
    # no sort / order statistic in the wrapper.  The loss normalises by the
    # in-kernel sampled count, so the estimator stays consistent.
    # TODO(synk): exact floor(num_bg*ratio) without-replacement sampling (like
    # torch.randperm) would need a k-th order statistic; we match in distribution only.
    seed = jax.random.randint(key, (), 0, 2 ** 31 - 1, dtype=jnp.int32)
    thr = max(min(int(background_sample_ratio * (2.0 ** 31)), 2 ** 31 - 1), 0)
    scalars = jnp.stack([seed, jnp.int32(thr)])

    # Metadata-only reshape to a lane-dense [B, 2, R, 128] view; native dtype is
    # streamed as-is (feed bf16 activations to halve HBM traffic on v5e).
    pred3 = predicted_params.reshape(B, 2, HW)
    true3 = true_params.reshape(B, 2, HW)
    if HW_pad != HW:
        # Only copies for ragged H*W; keep H*W % 128 == 0 upstream to avoid it.
        pad = ((0, 0), (0, 0), (0, HW_pad - HW))
        pred3 = jnp.pad(pred3, pad)
        true3 = jnp.pad(true3, pad)
    pred4 = pred3.reshape(B, 2, R, LANE)
    true4 = true3.reshape(B, 2, R, LANE)

    kernel = functools.partial(_focused_asc_kernel, hw=HW, aligned=aligned)
    in_spec = pl.BlockSpec((None, 2, tile_r, LANE), lambda b, t, s: (b, 0, t, 0))
    out_spec = pl.BlockSpec((None, None, 8, LANE), lambda b, t, s: (b, t, 0, 0))

    partials = pl.pallas_call(
        kernel,
        out_shape=jax.ShapeDtypeStruct((B, T, 8, LANE), jnp.float32),
        grid_spec=pltpu.PrefetchScalarGridSpec(
            num_scalar_prefetch=1,
            grid=(B, T),
            in_specs=[in_spec, in_spec],
            out_specs=out_spec,
        ),
        compiler_params=pltpu.CompilerParams(
            dimension_semantics=("parallel", "parallel"),
            vmem_limit_bytes=32 * 1024 * 1024),
    )(scalars, pred4, true4)

    sums = partials.sum(axis=(0, 1, 3))              # (8,)
    fg_sq, fg_cnt, bg_sq, bg_cnt = sums[0], sums[1], sums[2], sums[3]

    foreground_loss = jnp.where(
        fg_cnt > 0.0, 0.5 * fg_sq / jnp.maximum(fg_cnt, 1.0), 0.0)
    background_loss = jnp.where(
        bg_cnt > 0.0, 0.5 * bg_sq / jnp.maximum(bg_cnt, 1.0), 0.0)
    return foreground_loss * 10.0 + background_loss


def focused_asc_loss_reference(predicted_params, true_params, key,
                               background_sample_ratio=0.1):
    """Pure-JAX reference using the same hash-threshold sampling."""
    B, C, H, W = predicted_params.shape
    HW = H * W
    seed = jax.random.randint(key, (), 0, 2 ** 31 - 1, dtype=jnp.int32)
    thr = max(min(int(background_sample_ratio * (2.0 ** 31)), 2 ** 31 - 1), 0)

    p = predicted_params.reshape(B, 2, HW).astype(jnp.float32)
    t = true_params.reshape(B, 2, HW).astype(jnp.float32)
    idx = (jnp.arange(B, dtype=jnp.int32)[:, None] * HW
           + jnp.arange(HW, dtype=jnp.int32)[None, :])
    h = _hash31(idx.astype(jnp.uint32), seed.astype(jnp.uint32))

    fg = t[:, 0] > 0.0
    sel = jnp.logical_not(fg) & (h < thr)
    sq = (p[:, 0] - t[:, 0]) ** 2 + (p[:, 1] - t[:, 1]) ** 2

    fg_cnt = fg.astype(jnp.float32).sum()
    bg_cnt = sel.astype(jnp.float32).sum()
    fg_loss = jnp.where(
        fg_cnt > 0.0,
        0.5 * jnp.where(fg, sq, 0.0).sum() / jnp.maximum(fg_cnt, 1.0), 0.0)
    bg_loss = jnp.where(
        bg_cnt > 0.0,
        0.5 * jnp.where(sel, sq, 0.0).sum() / jnp.maximum(bg_cnt, 1.0), 0.0)
    return fg_loss * 10.0 + bg_loss


if __name__ == "__main__":
    key = jax.random.PRNGKey(0)
    k_pred, k_trueA, k_truealpha, k_mask, k_sample = jax.random.split(key, 5)

    B, C, H, W = 2, 2, 16, 16
    predicted_params = jax.random.normal(k_pred, (B, C, H, W), dtype=jnp.float32)

    # true_A: sparse positive amplitudes (foreground), zeros elsewhere (background)
    fg_mask = jax.random.uniform(k_mask, (B, H, W)) > 0.7
    true_A = jnp.where(fg_mask,
                       jnp.abs(jax.random.normal(k_trueA, (B, H, W))) + 0.1,
                       0.0)
    true_alpha = jax.random.normal(k_truealpha, (B, H, W), dtype=jnp.float32)
    true_params = jnp.stack([true_A, true_alpha], axis=1)       # [B, 2, H, W]

    loss_fn = jax.jit(functools.partial(focused_asc_loss,
                                        background_sample_ratio=0.1))
    loss = jax.block_until_ready(loss_fn(predicted_params, true_params, k_sample))
    ref = jax.block_until_ready(
        focused_asc_loss_reference(predicted_params, true_params, k_sample, 0.1))

    assert loss.shape == () and bool(jnp.isfinite(loss))
    assert abs(float(loss) - float(ref)) <= 1e-5 * max(1.0, abs(float(ref))), (loss, ref)

    # Ragged H*W (non-multiple of 128) exercises the masked generic path.
    H2 = W2 = 15
    pred2 = jax.random.normal(k_pred, (B, C, H2, W2), dtype=jnp.float32)
    fg2 = jax.random.uniform(k_mask, (B, H2, W2)) > 0.7
    tA2 = jnp.where(fg2, jnp.abs(jax.random.normal(k_trueA, (B, H2, W2))) + 0.1, 0.0)
    tal2 = jax.random.normal(k_truealpha, (B, H2, W2), dtype=jnp.float32)
    true2 = jnp.stack([tA2, tal2], axis=1)
    loss2 = jax.block_until_ready(
        jax.jit(functools.partial(focused_asc_loss, background_sample_ratio=0.1))(
            pred2, true2, k_sample))
    ref2 = jax.block_until_ready(
        focused_asc_loss_reference(pred2, true2, k_sample, 0.1))
    assert abs(float(loss2) - float(ref2)) <= 1e-5 * max(1.0, abs(float(ref2))), (loss2, ref2)

    print("KERNEL_OK")
</pallas_src>

<mosaic_0001>
module attributes {stable_mosaic.version = 11 : i64} {
  func.func @_focused_asc_kernel(%arg0: i32, %arg1: i32, %arg2: memref<2xi32, #tpu.memory_space<smem>>, %arg3: memref<1x2x2x128xf32, #tpu.memory_space<vmem>>, %arg4: memref<1x2x2x128xf32, #tpu.memory_space<vmem>>, %arg5: memref<1x1x8x128xf32, #tpu.memory_space<vmem>>) attributes {dimension_semantics = [#tpu.dimension_semantics<parallel>, #tpu.dimension_semantics<parallel>], iteration_bounds = array<i64: 2, 1>, scalar_prefetch = 1 : i64, scratch_operands = 0 : i64, tpu.core_type = #tpu.core_type<tc>, window_params = [{transform_indices = @transform_0, window_bounds = array<i64: 1, 2, 2, 128>}, {transform_indices = @transform_1, window_bounds = array<i64: 1, 2, 2, 128>}, {transform_indices = @transform_2, window_bounds = array<i64: 1, 1, 8, 128>}]} {
    %c0 = arith.constant 0 : index
    %0 = memref.load %arg2[%c0] : memref<2xi32, #tpu.memory_space<smem>>
    %c1 = arith.constant 1 : index
    %1 = memref.load %arg2[%c1] : memref<2xi32, #tpu.memory_space<smem>>
    %2 = tpu.iota {dimensions = array<i32: 0>} : vector<2x128xi32>
    %c2_i32 = arith.constant 2 : i32
    %3 = arith.muli %arg1, %c2_i32 : i32
    %4 = vector.broadcast %3 : i32 to vector<2x128xi32>
    %5 = arith.addi %2, %4 : vector<2x128xi32>
    %6 = tpu.iota {dimensions = array<i32: 1>} : vector<2x128xi32>
    %c128_i32 = arith.constant 128 : i32
    %7 = vector.broadcast %c128_i32 : i32 to vector<2x128xi32>
    %8 = arith.muli %5, %7 : vector<2x128xi32>
    %9 = arith.addi %8, %6 : vector<2x128xi32>
    %c0_0 = arith.constant 0 : index
    %c0_1 = arith.constant 0 : index
    %c0_2 = arith.constant 0 : index
    %c0_3 = arith.constant 0 : index
    %10 = vector.load %arg3[%c0_0, %c0_1, %c0_2, %c0_3] : memref<1x2x2x128xf32, #tpu.memory_space<vmem>>, vector<1x1x2x128xf32>
    %11 = vector.shape_cast %10 : vector<1x1x2x128xf32> to vector<2x128xf32>
    %c0_4 = arith.constant 0 : index
    %c1_5 = arith.constant 1 : index
    %c0_6 = arith.constant 0 : index
    %c0_7 = arith.constant 0 : index
    %12 = vector.load %arg3[%c0_4, %c1_5, %c0_6, %c0_7] : memref<1x2x2x128xf32, #tpu.memory_space<vmem>>, vector<1x1x2x128xf32>
    %13 = vector.shape_cast %12 : vector<1x1x2x128xf32> to vector<2x128xf32>
    %c0_8 = arith.constant 0 : index
    %c0_9 = arith.constant 0 : index
    %c0_10 = arith.constant 0 : index
    %c0_11 = arith.constant 0 : index
    %14 = vector.load %arg4[%c0_8, %c0_9, %c0_10, %c0_11] : memref<1x2x2x128xf32, #tpu.memory_space<vmem>>, vector<1x1x2x128xf32>
    %15 = vector.shape_cast %14 : vector<1x1x2x128xf32> to vector<2x128xf32>
    %c0_12 = arith.constant 0 : index
    %c1_13 = arith.constant 1 : index
    %c0_14 = arith.constant 0 : index
    %c0_15 = arith.constant 0 : index
    %16 = vector.load %arg4[%c0_12, %c1_13, %c0_14, %c0_15] : memref<1x2x2x128xf32, #tpu.memory_space<vmem>>, vector<1x1x2x128xf32>
    %17 = vector.shape_cast %16 : vector<1x1x2x128xf32> to vector<2x128xf32>
    %cst = arith.constant 0.000000e+00 : f32
    %18 = vector.broadcast %cst : f32 to vector<2x128xf32>
    %19 = arith.cmpf ogt, %15, %18 : vector<2x128xf32>
    %cst_16 = arith.constant dense<true> : vector<2x128xi1>
    %20 = arith.xori %19, %cst_16 : vector<2x128xi1>
    %c256_i32 = arith.constant 256 : i32
    %21 = arith.muli %arg0, %c256_i32 : i32
    %22 = vector.broadcast %21 : i32 to vector<2x128xi32>
    %23 = arith.addi %22, %9 : vector<2x128xi32>
    %24 = vector.broadcast %0 : i32 to vector<2x128xi32>
    %25 = arith.xori %23, %24 : vector<2x128xi32>
    %c-1640531535_i32 = arith.constant -1640531535 : i32
    %26 = vector.broadcast %c-1640531535_i32 : i32 to vector<2x128xi32>
    %27 = arith.muli %25, %26 : vector<2x128xi32>
    %c15_i32 = arith.constant 15 : i32
    %28 = vector.broadcast %c15_i32 : i32 to vector<2x128xi32>
    %29 = arith.shrui %27, %28 : vector<2x128xi32>
    %30 = arith.xori %27, %29 : vector<2x128xi32>
    %c1_i32 = arith.constant 1 : i32
    %31 = vector.broadcast %c1_i32 : i32 to vector<2x128xi32>
    %32 = arith.shrui %30, %31 : vector<2x128xi32>
    %33 = vector.broadcast %1 : i32 to vector<2x128xi32>
    %34 = arith.cmpi slt, %32, %33 : vector<2x128xi32>
    %35 = arith.andi %20, %34 : vector<2x128xi1>
    %36 = arith.subf %11, %15 : vector<2x128xf32>
    %37 = arith.subf %13, %17 : vector<2x128xf32>
    %38 = arith.mulf %36, %36 : vector<2x128xf32>
    %39 = arith.mulf %37, %37 : vector<2x128xf32>
    %40 = arith.addf %38, %39 : vector<2x128xf32>
    %cst_17 = arith.constant 0.000000e+00 : f32
    %41 = vector.broadcast %cst_17 : f32 to vector<2x128xf32>
    %42 = arith.select %19, %40, %41 : vector<2x128xi1>, vector<2x128xf32>
    %cst_18 = arith.constant dense<0.000000e+00> : vector<128xf32>
    %43 = vector.multi_reduction <add>, %42, %cst_18 [0] : vector<2x128xf32> to vector<128xf32>
    %44 = vector.shape_cast %43 : vector<128xf32> to vector<1x128xf32>
    %45 = arith.extui %19 : vector<2x128xi1> to vector<2x128xi32>
    %46 = arith.sitofp %45 : vector<2x128xi32> to vector<2x128xf32>
    %cst_19 = arith.constant dense<0.000000e+00> : vector<128xf32>
    %47 = vector.multi_reduction <add>, %46, %cst_19 [0] : vector<2x128xf32> to vector<128xf32>
    %48 = vector.shape_cast %47 : vector<128xf32> to vector<1x128xf32>
    %cst_20 = arith.constant 0.000000e+00 : f32
    %49 = vector.broadcast %cst_20 : f32 to vector<2x128xf32>
    %50 = arith.select %35, %40, %49 : vector<2x128xi1>, vector<2x128xf32>
    %cst_21 = arith.constant dense<0.000000e+00> : vector<128xf32>
    %51 = vector.multi_reduction <add>, %50, %cst_21 [0] : vector<2x128xf32> to vector<128xf32>
    %52 = vector.shape_cast %51 : vector<128xf32> to vector<1x128xf32>
    %53 = arith.extui %35 : vector<2x128xi1> to vector<2x128xi32>
    %54 = arith.sitofp %53 : vector<2x128xi32> to vector<2x128xf32>
    %cst_22 = arith.constant dense<0.000000e+00> : vector<128xf32>
    %55 = vector.multi_reduction <add>, %54, %cst_22 [0] : vector<2x128xf32> to vector<128xf32>
    %56 = vector.shape_cast %55 : vector<128xf32> to vector<1x128xf32>
    %cst_23 = arith.constant 0.000000e+00 : f32
    %57 = vector.broadcast %cst_23 : f32 to vector<4x128xf32>
    %58 = tpu.concatenate %44, %48, %52, %56, %57 in 0 : vector<1x128xf32>, vector<1x128xf32>, vector<1x128xf32>, vector<1x128xf32>, vector<4x128xf32> -> vector<8x128xf32>
    %c0_24 = arith.constant 0 : index
    %c0_25 = arith.constant 0 : index
    %c0_26 = arith.constant 0 : index
    %c0_27 = arith.constant 0 : index
    %59 = vector.load %arg5[%c0_24, %c0_25, %c0_26, %c0_27] : memref<1x1x8x128xf32, #tpu.memory_space<vmem>>, vector<1x1x8x128xf32>
    %60 = vector.shape_cast %59 : vector<1x1x8x128xf32> to vector<8x128xf32>
    %61 = vector.shape_cast %58 : vector<8x128xf32> to vector<1x1x8x128xf32>
    tpu.vector_store %arg5[%c0_24, %c0_25, %c0_26, %c0_27], %61 {strides = array<i32>} : memref<1x1x8x128xf32, #tpu.memory_space<vmem>>, vector<1x1x8x128xf32>,
    return
  }
  func.func @transform_0(%arg0: i32, %arg1: i32, %arg2: memref<2xi32, #tpu.memory_space<smem>>) -> (i32, i32, i32, i32) {
    %c0_i32 = arith.constant 0 : i32
    %c0_i32_0 = arith.constant 0 : i32
    %c0_i32_1 = arith.constant 0 : i32
    return %arg0, %c0_i32, %arg1, %c0_i32_0 : i32, i32, i32, i32
  }
  func.func @transform_1(%arg0: i32, %arg1: i32, %arg2: memref<2xi32, #tpu.memory_space<smem>>) -> (i32, i32, i32, i32) {
    %c0_i32 = arith.constant 0 : i32
    %c0_i32_0 = arith.constant 0 : i32
    %c0_i32_1 = arith.constant 0 : i32
    return %arg0, %c0_i32, %arg1, %c0_i32_0 : i32, i32, i32, i32
  }
  func.func @transform_2(%arg0: i32, %arg1: i32, %arg2: memref<2xi32, #tpu.memory_space<smem>>) -> (i32, i32, i32, i32) {
    %c0_i32 = arith.constant 0 : i32
    %c0_i32_0 = arith.constant 0 : i32
    %c0_i32_1 = arith.constant 0 : i32
    return %arg0, %arg1, %c0_i32, %c0_i32_0 : i32, i32, i32, i32
  }
}

</mosaic_0001>

<bundles_post_ra>
// kernel: focused_asc_loss.1
= control target key start
LH: loop header
LB: loop body
LE: loop exit
PB: predicated region body
PF: predicated region fallthrough
CT: control target
= control target key end

     0   :  { %s544_s0 = inlined_call_operand.vmem [shape: s32[2], index: 0, kind: input, shape index: {}]   ;;  %s545_s1 = inlined_call_operand.vmem [shape: f32[2,2,2,128], index: 1, kind: input, shape index: {}]   ;;  %s546_s2 = inlined_call_operand.vmem [shape: f32[2,2,2,128], index: 2, kind: input, shape index: {}]   ;;  %s547_s3 = inlined_call_operand.vmem [shape: f32[2,1,8,128], index: 3, kind: output, shape index: {}]  }
   0x1   :  { %s8_s14 = sshll.u32 %s544_s0, 4  ;;  %s9_s14 = int_to_ptr.vmem [resolvable:$true] %s8_s14 }
   0x2   :  { %s432_s15 = scalar_lea.vmem %s9_s14, 16  ;;  %p437_p1 = scmp.lt.s32.totalorder %s9_s14, %s9_s14 }
   0x3   :  { %p433_p0 = scmp.ne.s32.totalorder %s9_s14, %s432_s15  ;;  %p438_p2 = scmp.lt.s32.totalorder %s432_s15, %s432_s15 }
   0x5   :  { %p439_p3 = por %p438_p2, %p437_p1 }
   0x7   :  { %p440_p4 = pnand %p439_p3, %p433_p0 }
   0x9   :  { %443 = shalt.err (!%p440_p4)  }
   0xa   :  { %s470_s16 = smov [#allocation3]  }
   0xb   :  { %11 = dma.vmem_to_smem %s9_s14, 16, %s470_s16, [#allocation2] }
   0xc   :  { %456 = dma.done.wait [#allocation2], 16 }
   0xd   :  { %457 = vsyncadd [#allocation2], 4294967280 }
   0xe   :  { %13 = sfence }
   0xf   :  { %s496_s17 = smov 0   ;;  %s498_s18 = smov 0  }
  0x10   :  { %s500_s19 = smov 0  }
  0x11 LB: > { %s31_s0 = sadd.s32 1, %s464_s18  ;;  %p389_p5 = scmp.ge.s32.totalorder %s468_s19, 1  ;;  %s468_s19 = sphi %s500_s19, %s19_s19   ;;  %s464_s18 = sphi %s498_s18, %s549_s18   ;;  %s460_s17 = sphi %s496_s17, %s548_s17  }
  0x12   : > { %p33_p6 = scmp.ge.s32.totalorder %s31_s0, 2  ;;  %p153_p7 = scmp.lt.s32.totalorder %s468_s19, 3 }
  0x14   : > { %s551_s0 = smov (%p33_p6, %s31_s0), 0  ;;  %p154_p8 = pnand %p389_p5, %p153_p7 }
  0x15   : > { %p188_p9 = scmp.lt.s32.totalorder (!%p154_p8), %s460_s17, 1  ;;  %s211_s20 = sld [smem:[#allocation3]] (!%p154_p8)  ;;  %v213_v0 = vlaneseq (!%p154_p8)  ;;  %vm248_vm0 = vcmask (!%p154_p8), 1041408   ;;  %v471_v14 = vmov (!%p154_p8), 0.0   ;;  %vm472_vm2 = vmmov (!%p154_p8), 1  }
  0x16   : > { %157 = sbr.rel (%p154_p8) target bundleno = 61 (0x3d), region = 28  ;;  %s398_s21 = sshll.u32 (!%p154_p8), %s460_s17, 8  ;;  %vm282_vm6 = vcmask (!%p154_p8), 1040384   ;;  %vm285_vm7 = vcmask (!%p154_p8), 1042432   ;;  %vm287_vm8 = vcmask (!%p154_p8), 1043456  }
  0x17   : > { %v214_v1 = vshrl.u32 (!%p154_p8), %v213_v0, 7  ;;  %v219_v2 = vand.u32 (!%p154_p8), 127, %v213_v0  ;;  %v231_v4 = vstv (!%p154_p8), %s398_s21  ;;  %s395_s29 = sld [smem:[#allocation3 + $0x1]] (!%p154_p8) }
  0x19   : > { %v220_v3 = vmul.u32 (!%p154_p8), 128, %v214_v1 }
  0x1b   : > { %v221_v5 = vadd.s32 (!%p154_p8), %v220_v3, %v219_v2  ;;  %v233_v10 = vstv (!%p154_p8), %s211_s20 }
  0x1d   : > { %s553_s17 = smov (!%p188_p9, %s460_s17), 1  ;;  %v232_v12 = vadd.s32 %v231_v4, %v221_v5  ;;  %v239_v29 = vstv %s395_s29 }
  0x1e   : > { %s403_s22 = sshll.u32 %s553_s17, 2  ;;  %s394_s30 = sshll.u32 %s553_s17, 3 }
  0x1f   : > { %s195_s25 = scalar_lea.vmem %s545_s1, %s403_s22  ;;  %s203_s28 = scalar_lea.vmem %s546_s2, %s403_s22  ;;  %v234_v18 = vxor.u32 %v233_v10, %v232_v12 }
  0x20   : > { %v222_v6 = vld [vmem:[%s195_s25] sm:$0x3]  ;;  %v396_v7 = vld [vmem:[%s195_s25 + $0x2] sm:$0x3]  ;;  %s210_s6 = scalar_lea.vmem %s547_s3, %s394_s30 }
  0x21   : > { %v225_v8 = vld [vmem:[%s203_s28] sm:$0x3]  ;;  %v397_v9 = vld [vmem:[%s203_s28 + $0x2] sm:$0x3]  ;;  %v235_v21 = vmul.u32 2654435761, %v234_v18 }
  0x22   : > { %vm228_vm1 = vcmp.gt.f32.partialorder %v225_v8, 0.0  ;;  %v242_v11 = vsub.f32 %v222_v6, %v225_v8  ;;  %v243_v13 = vsub.f32 %v396_v7, %v397_v9 }
  0x23   : > { %v399_v15 = vsel %vm228_vm1, 1.0, %v471_v14  ;;  %v236_v24 = vshrl.u32 %v235_v21, 15  ;;  %vm229_vm3 = vmxor %vm228_vm1, %vm472_vm2 }
  0x24   : > { %v244_v16 = vmul.f32 %v242_v11, %v242_v11  ;;  %v258_v17 = vsel %vm248_vm0, %v399_v15, 0.0  ;;  %v245_v19 = vmul.f32 %v243_v13, %v243_v13 }
  0x25   : > { %v259_v20 = vrot.slane %v258_v17, 4  ;;  %v237_v27 = vxor.u32 %v236_v24, %v235_v21 }
  0x26   : > { %v246_v22 = vadd.f32 %v245_v19, %v244_v16 }
  0x27   : > { %v260_v23 = vadd.f32 %v259_v20, %v258_v17  ;;  %v238_v31 = vshrl.u32 %v237_v27, 1 }
  0x28   : > { %v247_v25 = vsel %vm228_vm1, %v246_v22, 0.0 }
  0x29   : > { %v249_v26 = vsel %vm248_vm0, %v247_v25, 0.0  ;;  %v261_v30 = vrot.slane %v260_v23, 2  ;;  %vm240_vm4 = vcmp.lt.s32.totalorder %v238_v31, %v239_v29 }
  0x2a   : > { %v250_v28 = vrot.slane %v249_v26, 4  ;;  %vm241_vm5 = vmand %vm229_vm3, %vm240_vm4 }
  0x2b   : > { %v262_v34 = vadd.f32 %v261_v30, %v260_v23  ;;  %v265_v36 = vsel %vm241_vm5, %v246_v22, 0.0  ;;  %v400_v37 = vsel %vm241_vm5, 1.0, %v471_v14 }
  0x2c   : > { %v251_v32 = vadd.f32 %v250_v28, %v249_v26  ;;  %v266_v38 = vsel %vm248_vm0, %v265_v36, 0.0  ;;  %v275_v39 = vsel %vm248_vm0, %v400_v37, 0.0 }
  0x2d   : > { %v267_v40 = vrot.slane %v266_v38, 4  ;;  %v276_v41 = vrot.slane %v275_v39, 4  ;;  %v263_v43 = vrot.slane %v262_v34, 1 }
  0x2e   : > { %v252_v33 = vrot.slane %v251_v32, 2 }
  0x2f   : > { %v268_v44 = vadd.f32 %v267_v40, %v266_v38  ;;  %v277_v45 = vadd.f32 %v276_v41, %v275_v39  ;;  %v264_v49 = vadd.f32 %v263_v43, %v262_v34 }
  0x30   : > { %v253_v35 = vadd.f32 %v252_v33, %v251_v32 }
  0x31   : > { %v269_v46 = vrot.slane %v268_v44, 2  ;;  %v278_v47 = vrot.slane %v277_v45, 2 }
  0x32   : > { %v254_v42 = vrot.slane %v253_v35, 1 }
  0x33   : > { %v270_v50 = vadd.f32 %v269_v46, %v268_v44  ;;  %v279_v51 = vadd.f32 %v278_v47, %v277_v45 }
  0x34   : > { %v255_v48 = vadd.f32 %v254_v42, %v253_v35 }
  0x35   : > { %v271_v52 = vrot.slane %v270_v50, 1  ;;  %v280_v53 = vrot.slane %v279_v51, 1 }
  0x36   : > { %v283_v54 = vsel %vm282_vm6, %v255_v48, %v264_v49 }
  0x37   : > { %v272_v55 = vadd.f32 %v271_v52, %v270_v50  ;;  %v281_v56 = vadd.f32 %v280_v53, %v279_v51 }
  0x39   : > { %v284_v57 = vsel %vm248_vm0, %v283_v54, %v272_v55 }
  0x3a   : > { %v286_v58 = vsel %vm285_vm7, %v284_v57, %v281_v56 }
  0x3b   : > { %v288_v59 = vsel %vm287_vm8, %v286_v58, 0.0 }
  0x3c   : > { %289 = vst [vmem:[%s210_s6] sm:$0xff] %v288_v59 }
  0x3d PF: > { %s19_s19 = sadd.s32 1, %s468_s19   ;;  %s548_s17 = smov %s464_s18 }
  0x3e   : > { %p16_p10 = scmp.ge.s32.totalorder %s19_s19, 4   ;;  %s549_s18 = smov %s551_s0 }
  0x40   :  { %18 = sbr.rel (!%p16_p10) target bundleno = 17 (0x11), region = 63 }

</bundles_post_ra>
